<compile_context>
chip_gen: v7x
topology: tpu7x:2x2x1
jax: 0.10.0
libtpu: 0.0.40
codegen_flags: <defaults>
</compile_context>

<pallas_src>
import functools

import jax
import jax.numpy as jnp
import numpy as np
from jax.experimental import pallas as pl
from jax.experimental.pallas import tpu as pltpu


def _round_up(x, m):
    return ((x + m - 1) // m) * m


def _focal_loss_kernel(pred_ref, tgt_ref, tgtb_ref, lam_ref, alpha_ref,
                       out_ref, acc_ref, *, gamma, batch, block_b, out_scale,
                       mask_padding):
    """One batch tile per grid step.

    pred_ref : (C, Bt)  logits tile, classes on sublanes, batch on lanes
    tgt_ref  : (1, Bt)  int32 target indices (lane-dense)
    tgtb_ref : (1, Bt)  int32 mixup target indices
    lam_ref  : (1, 1)   f32 mixup lambda (SMEM)
    alpha_ref: (C, 1)   f32 per-class alpha
    out_ref  : (1, 1)   f32 final reduced loss (SMEM)
    acc_ref  : (1,)     f32 running sum scratch (SMEM, persists across grid)
    """
    i = pl.program_id(0)

    @pl.when(i == 0)
    def _init():
        acc_ref[0] = jnp.float32(0.0)

    pred = pred_ref[...].astype(jnp.float32)          # (C, Bt), cast in VMEM
    C, Bt = pred.shape
    lam = lam_ref[0, 0]

    # one-hot via iota compare along the class (sublane) axis
    cls_ids = jax.lax.broadcasted_iota(jnp.int32, (C, Bt), 0)
    oh_a = (cls_ids == tgt_ref[...]).astype(jnp.float32)    # (C, Bt)
    oh_b = (cls_ids == tgtb_ref[...]).astype(jnp.float32)   # (C, Bt)

    # softmax statistics over the class axis -> (1, Bt) row vectors
    m = jnp.max(pred, axis=0, keepdims=True)                 # (1, Bt)
    shifted = pred - m
    denom = jnp.sum(jnp.exp(shifted), axis=0, keepdims=True)  # (1, Bt)
    inv_denom = pl.reciprocal(denom, approx=True)             # EUP seed
    inv_denom = inv_denom * (2.0 - denom * inv_denom)         # Newton -> ~f32
    log_denom = jnp.log(denom)

    # gathered per-row quantities (no full (C, Bt) softmax / log_probs)
    s_a = jnp.sum(shifted * oh_a, axis=0, keepdims=True)      # shifted[target]
    s_b = jnp.sum(shifted * oh_b, axis=0, keepdims=True)
    alpha = alpha_ref[...].astype(jnp.float32)                 # (C, 1)
    a_a = jnp.sum(alpha * oh_a, axis=0, keepdims=True)         # alpha[target]
    a_b = jnp.sum(alpha * oh_b, axis=0, keepdims=True)

    # p_t = sum(softmax * target_one_hot) = lam*p_a + (1-lam)*p_b
    p_t = (lam * jnp.exp(s_a) + (1.0 - lam) * jnp.exp(s_b)) * inv_denom
    one_minus = 1.0 - p_t
    if gamma == 2.0:
        focal_w = one_minus * one_minus            # avoid pow (exp+log on EUP)
    elif gamma == 1.0:
        focal_w = one_minus
    elif gamma == 0.0:
        focal_w = jnp.ones_like(one_minus)
    else:
        focal_w = one_minus ** jnp.float32(gamma)

    # sum_c(-alpha_c * target_oh_c * log_prob_c)
    #   = lam*alpha[a]*(-log_p[a]) + (1-lam)*alpha[b]*(-log_p[b])
    nll = lam * a_a * (log_denom - s_a) + (1.0 - lam) * a_b * (log_denom - s_b)
    loss_row = focal_w * nll                                   # (1, Bt)

    if mask_padding:
        col = jax.lax.broadcasted_iota(jnp.int32, (1, Bt), 1)
        valid = (i * block_b + col) < batch
        loss_row = jnp.where(valid, loss_row, 0.0)

    acc_ref[0] += jnp.sum(loss_row)

    @pl.when(i == pl.num_programs(0) - 1)
    def _finalize():
        out_ref[0, 0] = acc_ref[0] * jnp.float32(out_scale)


def _default_block_b(num_classes, itemsize=4, budget_bytes=4 * 1024 * 1024):
    """Lane-tile (batch columns) sized so one pred buffer stays ~<= 4 MiB.

    Double-buffered by Pallas this keeps well under the scoped-VMEM default of
    every generation (v5e 16 MiB, v6e/v7x 32 MiB, v7x physical 64 MiB)."""
    b = budget_bytes // max(1, num_classes * itemsize)
    return max(128, min(8192, (b // 128) * 128))


def focal_loss_with_mixup(pred, target, target_b=None, lam=None, alpha=None,
                          gamma=2.0, reduction="mean", block_b=None):
    """JAX wrapper reproducing FocalLossWithMixup.forward ('mean'/'sum')."""
    if reduction not in ("mean", "sum"):
        # TODO(synk): reduction='none' (per-sample vector output) not wired up.
        raise NotImplementedError("only 'mean' and 'sum' reductions supported")

    B, C = pred.shape
    if alpha is None:
        alpha = jnp.ones((C,), jnp.float32)
    if target_b is None or lam is None:
        target_b = target
        lam = 1.0

    if block_b is None:
        block_b = _default_block_b(C)
    block_b = max(128, _round_up(int(block_b), 128))
    eff_block = min(block_b, _round_up(B, 128))
    padded_b = _round_up(B, eff_block)
    pad = padded_b - B
    grid = padded_b // eff_block

    # lane-dense layout: classes on sublanes, batch on lanes.  (For C that is a
    # large multiple of 128 a (B, C) row-major variant would avoid the
    # transpose; for this module's small num_classes this layout is ~25x denser.)
    pred_t = jnp.transpose(pred)                              # (C, B), orig dtype
    tgt = target.astype(jnp.int32).reshape(1, B)
    tgtb = target_b.astype(jnp.int32).reshape(1, B)
    if pad:
        pred_t = jnp.pad(pred_t, ((0, 0), (0, pad)))
        tgt = jnp.pad(tgt, ((0, 0), (0, pad)))
        tgtb = jnp.pad(tgtb, ((0, 0), (0, pad)))

    kernel = functools.partial(
        _focal_loss_kernel,
        gamma=float(gamma),
        batch=B,
        block_b=eff_block,
        out_scale=(1.0 / B) if reduction == "mean" else 1.0,
        mask_padding=(pad != 0),
    )

    out = pl.pallas_call(
        kernel,
        out_shape=jax.ShapeDtypeStruct((1, 1), jnp.float32),
        grid=(grid,),
        in_specs=[
            pl.BlockSpec((C, eff_block), lambda i: (0, i)),          # pred (C, Bt)
            pl.BlockSpec((1, eff_block), lambda i: (0, i)),          # target
            pl.BlockSpec((1, eff_block), lambda i: (0, i)),          # target_b
            pl.BlockSpec(memory_space=pltpu.MemorySpace.SMEM),       # lam (1,1)
            pl.BlockSpec(memory_space=pltpu.MemorySpace.VMEM),       # alpha (C,1)
        ],
        out_specs=pl.BlockSpec(memory_space=pltpu.MemorySpace.SMEM),
        scratch_shapes=[pltpu.SMEM((1,), jnp.float32)],
        compiler_params=pltpu.CompilerParams(
            dimension_semantics=("arbitrary",)),
    )(
        pred_t,
        tgt,
        tgtb,
        jnp.asarray(lam, jnp.float32).reshape(1, 1),
        jnp.asarray(alpha, jnp.float32).reshape(C, 1),
    )
    return out[0, 0]


def _reference(pred, target, target_b, lam, alpha, gamma):
    """Pure-JAX reference mirroring the PyTorch forward exactly (mean)."""
    pred = pred.astype(jnp.float32)
    C = pred.shape[1]
    sm = jax.nn.softmax(pred, axis=1)
    oh = jax.nn.one_hot(target, C, dtype=jnp.float32)
    oh_b = jax.nn.one_hot(target_b, C, dtype=jnp.float32)
    target_oh = lam * oh + (1.0 - lam) * oh_b
    p_t = jnp.sum(sm * target_oh, axis=1)
    focal_w = (1.0 - p_t) ** gamma
    log_probs = jax.nn.log_softmax(pred, axis=1)
    weighted = -alpha.reshape(1, -1) * target_oh * log_probs
    focal = focal_w.reshape(-1, 1) * weighted
    return jnp.sum(focal) / pred.shape[0]


if __name__ == "__main__":
    num_classes = 5
    batch = 8
    gamma = 2.0

    key = jax.random.PRNGKey(0)
    k_pred, k_t, k_tb = jax.random.split(key, 3)
    pred = jax.random.normal(k_pred, (batch, num_classes), dtype=jnp.float32)
    target = jax.random.randint(k_t, (batch,), 0, num_classes, dtype=jnp.int32)
    target_b = jax.random.randint(k_tb, (batch,), 0, num_classes, dtype=jnp.int32)
    lam = 0.7
    alpha = jnp.array([1.0, 2.0, 0.5, 1.5, 1.0], jnp.float32)

    # mixup path
    loss = jax.block_until_ready(
        focal_loss_with_mixup(pred, target, target_b=target_b, lam=lam,
                              alpha=alpha, gamma=gamma))
    ref = _reference(pred, target, target_b, lam, alpha, gamma)
    np.testing.assert_allclose(np.asarray(loss), np.asarray(ref),
                               rtol=1e-5, atol=1e-5)

    # no-mixup path (target_b=None, lam=None), default alpha = ones
    loss2 = jax.block_until_ready(focal_loss_with_mixup(pred, target, gamma=gamma))
    ref2 = _reference(pred, target, target, 1.0,
                      jnp.ones((num_classes,), jnp.float32), gamma)
    np.testing.assert_allclose(np.asarray(loss2), np.asarray(ref2),
                               rtol=1e-5, atol=1e-5)

    # multi-tile path: batch not a multiple of the tile -> grid > 1 + masked tail
    batch2 = 300
    k2p, k2t, k2tb = jax.random.split(jax.random.PRNGKey(1), 3)
    pred2 = jax.random.normal(k2p, (batch2, num_classes), dtype=jnp.float32)
    target2 = jax.random.randint(k2t, (batch2,), 0, num_classes, dtype=jnp.int32)
    target2b = jax.random.randint(k2tb, (batch2,), 0, num_classes, dtype=jnp.int32)
    loss3 = jax.block_until_ready(
        focal_loss_with_mixup(pred2, target2, target_b=target2b, lam=0.3,
                              alpha=alpha, gamma=gamma, block_b=128))
    ref3 = _reference(pred2, target2, target2b, 0.3, alpha, gamma)
    np.testing.assert_allclose(np.asarray(loss3), np.asarray(ref3),
                               rtol=1e-5, atol=1e-5)

    print("KERNEL_OK")
</pallas_src>

<mosaic_0001>
module attributes {stable_mosaic.version = 11 : i64} {
  func.func @_focal_loss_kernel(%arg0: i32, %arg1: memref<5x128xf32, #tpu.memory_space<vmem>>, %arg2: memref<1x128xi32, #tpu.memory_space<vmem>>, %arg3: memref<1x128xi32, #tpu.memory_space<vmem>>, %arg4: memref<1x1xf32, #tpu.memory_space<smem>>, %arg5: memref<5x1xf32, #tpu.memory_space<vmem>>, %arg6: memref<1x1xf32, #tpu.memory_space<smem>>, %arg7: memref<1xf32, #tpu.memory_space<smem>>) attributes {dimension_semantics = [#tpu.dimension_semantics<arbitrary>], iteration_bounds = array<i64: 1>, scalar_prefetch = 0 : i64, scratch_operands = 1 : i64, tpu.core_type = #tpu.core_type<tc>, window_params = [{transform_indices = @transform_0, window_bounds = array<i64: 5, 128>}, {transform_indices = @transform_1, window_bounds = array<i64: 1, 128>}, {transform_indices = @transform_2, window_bounds = array<i64: 1, 128>}, {transform_indices = @transform_3, window_bounds = array<i64: 1, 1>}, {pipeline_mode = #tpu.pipeline_mode<synchronous>, transform_indices = @transform_4, window_bounds = array<i64: 5, 1>}, {transform_indices = @transform_5, window_bounds = array<i64: 1, 1>}]} {
    %c0_i32 = arith.constant 0 : i32
    %0 = arith.cmpi eq, %arg0, %c0_i32 : i32
    %1 = arith.extui %0 : i1 to i32
    %c0_i32_0 = arith.constant 0 : i32
    %2 = arith.cmpi ne, %1, %c0_i32_0 : i32
    scf.if %2 {
      %cst_25 = arith.constant 0.000000e+00 : f32
      %c0_26 = arith.constant 0 : index
      %85 = memref.load %arg7[%c0_26] : memref<1xf32, #tpu.memory_space<smem>>
      memref.store %cst_25, %arg7[%c0_26] : memref<1xf32, #tpu.memory_space<smem>>
    } else {
    }
    %c0 = arith.constant 0 : index
    %c0_1 = arith.constant 0 : index
    %3 = vector.load %arg1[%c0, %c0_1] : memref<5x128xf32, #tpu.memory_space<vmem>>, vector<5x128xf32>
    %c0_2 = arith.constant 0 : index
    %c0_3 = arith.constant 0 : index
    %4 = memref.load %arg4[%c0_2, %c0_3] : memref<1x1xf32, #tpu.memory_space<smem>>
    %5 = tpu.iota {dimensions = array<i32: 0>} : vector<5x128xi32>
    %c0_4 = arith.constant 0 : index
    %c0_5 = arith.constant 0 : index
    %6 = vector.load %arg2[%c0_4, %c0_5] : memref<1x128xi32, #tpu.memory_space<vmem>>, vector<1x128xi32>
    %7 = vector.broadcast %6 : vector<1x128xi32> to vector<5x128xi32>
    %8 = arith.cmpi eq, %5, %7 : vector<5x128xi32>
    %9 = arith.extui %8 : vector<5x128xi1> to vector<5x128xi32>
    %10 = arith.sitofp %9 : vector<5x128xi32> to vector<5x128xf32>
    %c0_6 = arith.constant 0 : index
    %c0_7 = arith.constant 0 : index
    %11 = vector.load %arg3[%c0_6, %c0_7] : memref<1x128xi32, #tpu.memory_space<vmem>>, vector<1x128xi32>
    %12 = vector.broadcast %11 : vector<1x128xi32> to vector<5x128xi32>
    %13 = arith.cmpi eq, %5, %12 : vector<5x128xi32>
    %14 = arith.extui %13 : vector<5x128xi1> to vector<5x128xi32>
    %15 = arith.sitofp %14 : vector<5x128xi32> to vector<5x128xf32>
    %cst = arith.constant dense<0xFF800000> : vector<128xf32>
    %16 = vector.multi_reduction <maximumf>, %3, %cst [0] : vector<5x128xf32> to vector<128xf32>
    %17 = vector.shape_cast %16 : vector<128xf32> to vector<1x128xf32>
    %18 = vector.broadcast %17 : vector<1x128xf32> to vector<5x128xf32>
    %19 = arith.subf %3, %18 : vector<5x128xf32>
    %20 = math.exp %19 : vector<5x128xf32>
    %cst_8 = arith.constant dense<0.000000e+00> : vector<128xf32>
    %21 = vector.multi_reduction <add>, %20, %cst_8 [0] : vector<5x128xf32> to vector<128xf32>
    %22 = vector.shape_cast %21 : vector<128xf32> to vector<1x128xf32>
    %23 = tpu.reciprocal %22 {approx = true} : vector<1x128xf32> -> vector<1x128xf32>
    %24 = arith.mulf %22, %23 : vector<1x128xf32>
    %cst_9 = arith.constant 2.000000e+00 : f32
    %25 = vector.broadcast %cst_9 : f32 to vector<1x128xf32>
    %26 = arith.subf %25, %24 : vector<1x128xf32>
    %27 = arith.mulf %23, %26 : vector<1x128xf32>
    %28 = math.log %22 : vector<1x128xf32>
    %29 = arith.mulf %19, %10 : vector<5x128xf32>
    %cst_10 = arith.constant dense<0.000000e+00> : vector<128xf32>
    %30 = vector.multi_reduction <add>, %29, %cst_10 [0] : vector<5x128xf32> to vector<128xf32>
    %31 = vector.shape_cast %30 : vector<128xf32> to vector<1x128xf32>
    %32 = arith.mulf %19, %15 : vector<5x128xf32>
    %cst_11 = arith.constant dense<0.000000e+00> : vector<128xf32>
    %33 = vector.multi_reduction <add>, %32, %cst_11 [0] : vector<5x128xf32> to vector<128xf32>
    %34 = vector.shape_cast %33 : vector<128xf32> to vector<1x128xf32>
    %c0_12 = arith.constant 0 : index
    %c0_13 = arith.constant 0 : index
    %35 = vector.load %arg5[%c0_12, %c0_13] : memref<5x1xf32, #tpu.memory_space<vmem>>, vector<5x1xf32>
    %36 = vector.broadcast %35 : vector<5x1xf32> to vector<5x128xf32>
    %37 = arith.mulf %36, %10 : vector<5x128xf32>
    %cst_14 = arith.constant dense<0.000000e+00> : vector<128xf32>
    %38 = vector.multi_reduction <add>, %37, %cst_14 [0] : vector<5x128xf32> to vector<128xf32>
    %39 = vector.shape_cast %38 : vector<128xf32> to vector<1x128xf32>
    %40 = vector.broadcast %35 : vector<5x1xf32> to vector<5x128xf32>
    %41 = arith.mulf %40, %15 : vector<5x128xf32>
    %cst_15 = arith.constant dense<0.000000e+00> : vector<128xf32>
    %42 = vector.multi_reduction <add>, %41, %cst_15 [0] : vector<5x128xf32> to vector<128xf32>
    %43 = vector.shape_cast %42 : vector<128xf32> to vector<1x128xf32>
    %44 = math.exp %31 : vector<1x128xf32>
    %45 = vector.broadcast %4 : f32 to vector<1x128xf32>
    %46 = arith.mulf %45, %44 : vector<1x128xf32>
    %cst_16 = arith.constant 1.000000e+00 : f32
    %47 = arith.subf %cst_16, %4 : f32
    %48 = math.exp %34 : vector<1x128xf32>
    %49 = vector.broadcast %47 : f32 to vector<1x128xf32>
    %50 = arith.mulf %49, %48 : vector<1x128xf32>
    %51 = arith.addf %46, %50 : vector<1x128xf32>
    %52 = arith.mulf %51, %27 : vector<1x128xf32>
    %cst_17 = arith.constant 1.000000e+00 : f32
    %53 = vector.broadcast %cst_17 : f32 to vector<1x128xf32>
    %54 = arith.subf %53, %52 : vector<1x128xf32>
    %55 = arith.mulf %54, %54 : vector<1x128xf32>
    %56 = vector.broadcast %4 : f32 to vector<1x128xf32>
    %57 = arith.mulf %56, %39 : vector<1x128xf32>
    %58 = arith.subf %28, %31 : vector<1x128xf32>
    %59 = arith.mulf %57, %58 : vector<1x128xf32>
    %cst_18 = arith.constant 1.000000e+00 : f32
    %60 = arith.subf %cst_18, %4 : f32
    %61 = vector.broadcast %60 : f32 to vector<1x128xf32>
    %62 = arith.mulf %61, %43 : vector<1x128xf32>
    %63 = arith.subf %28, %34 : vector<1x128xf32>
    %64 = arith.mulf %62, %63 : vector<1x128xf32>
    %65 = arith.addf %59, %64 : vector<1x128xf32>
    %66 = arith.mulf %55, %65 : vector<1x128xf32>
    %67 = tpu.iota {dimensions = array<i32: 1>} : vector<1x128xi32>
    %c128_i32 = arith.constant 128 : i32
    %68 = arith.muli %arg0, %c128_i32 : i32
    %69 = vector.broadcast %68 : i32 to vector<1x128xi32>
    %70 = arith.addi %69, %67 : vector<1x128xi32>
    %c8_i32 = arith.constant 8 : i32
    %71 = vector.broadcast %c8_i32 : i32 to vector<1x128xi32>
    %72 = arith.cmpi slt, %70, %71 : vector<1x128xi32>
    %cst_19 = arith.constant 0.000000e+00 : f32
    %73 = vector.broadcast %cst_19 : f32 to vector<1x128xf32>
    %74 = arith.select %72, %66, %73 : vector<1x128xi1>, vector<1x128xf32>
    %c0_20 = arith.constant 0 : index
    %75 = memref.load %arg7[%c0_20] : memref<1xf32, #tpu.memory_space<smem>>
    %76 = vector.shape_cast %74 : vector<1x128xf32> to vector<1x1x128xf32>
    %cst_21 = arith.constant dense<0.000000e+00> : vector<1xf32>
    %77 = vector.multi_reduction <add>, %76, %cst_21 [1, 2] : vector<1x1x128xf32> to vector<1xf32>
    %78 = vector.shape_cast %77 : vector<1xf32> to vector<1x1x1xf32>
    %79 = vector.extract %78[0, 0, 0] : f32 from vector<1x1x1xf32>
    %80 = arith.addf %75, %79 : f32
    %c0_22 = arith.constant 0 : index
    %81 = memref.load %arg7[%c0_22] : memref<1xf32, #tpu.memory_space<smem>>
    memref.store %80, %arg7[%c0_22] : memref<1xf32, #tpu.memory_space<smem>>
    %c0_i32_23 = arith.constant 0 : i32
    %82 = arith.cmpi eq, %arg0, %c0_i32_23 : i32
    %83 = arith.extui %82 : i1 to i32
    %c0_i32_24 = arith.constant 0 : i32
    %84 = arith.cmpi ne, %83, %c0_i32_24 : i32
    scf.if %84 {
      %c0_25 = arith.constant 0 : index
      %85 = memref.load %arg7[%c0_25] : memref<1xf32, #tpu.memory_space<smem>>
      %cst_26 = arith.constant 1.250000e-01 : f32
      %86 = arith.mulf %85, %cst_26 : f32
      %c0_27 = arith.constant 0 : index
      %c0_28 = arith.constant 0 : index
      %87 = memref.load %arg6[%c0_27, %c0_28] : memref<1x1xf32, #tpu.memory_space<smem>>
      memref.store %86, %arg6[%c0_27, %c0_28] : memref<1x1xf32, #tpu.memory_space<smem>>
    } else {
    }
    return
  }
  func.func @transform_0(%arg0: i32) -> (i32, i32) {
    %c0_i32 = arith.constant 0 : i32
    %c0_i32_0 = arith.constant 0 : i32
    return %c0_i32, %arg0 : i32, i32
  }
  func.func @transform_1(%arg0: i32) -> (i32, i32) {
    %c0_i32 = arith.constant 0 : i32
    %c0_i32_0 = arith.constant 0 : i32
    return %c0_i32, %arg0 : i32, i32
  }
  func.func @transform_2(%arg0: i32) -> (i32, i32) {
    %c0_i32 = arith.constant 0 : i32
    %c0_i32_0 = arith.constant 0 : i32
    return %c0_i32, %arg0 : i32, i32
  }
  func.func @transform_3(%arg0: i32) -> (i32, i32) {
    %c0_i32 = arith.constant 0 : i32
    %c0_i32_0 = arith.constant 0 : i32
    %c0_i32_1 = arith.constant 0 : i32
    return %c0_i32, %c0_i32_0 : i32, i32
  }
  func.func @transform_4(%arg0: i32) -> (i32, i32) {
    %c0_i32 = arith.constant 0 : i32
    %c0_i32_0 = arith.constant 0 : i32
    %c0_i32_1 = arith.constant 0 : i32
    return %c0_i32, %c0_i32_0 : i32, i32
  }
  func.func @transform_5(%arg0: i32) -> (i32, i32) {
    %c0_i32 = arith.constant 0 : i32
    %c0_i32_0 = arith.constant 0 : i32
    %c0_i32_1 = arith.constant 0 : i32
    return %c0_i32, %c0_i32_0 : i32, i32
  }
}

</mosaic_0001>

<bundles_post_ra>
// kernel: tpu_custom_call.1
= control target key start
LH: loop header
LB: loop body
LE: loop exit
PB: predicated region body
PF: predicated region fallthrough
CT: control target
= control target key end

     0   :  { %v205_v1 = vmov 0   ;;  %s276_s0 = inlined_call_operand.vmem [shape: f32[5,128], index: 0, kind: input, shape index: {}]   ;;  %s277_s1 = inlined_call_operand.vmem [shape: s32[1,128], index: 1, kind: input, shape index: {}]   ;;  %s278_s2 = inlined_call_operand.vmem [shape: s32[1,128], index: 2, kind: input, shape index: {}]   ;;  %s279_s3 = inlined_call_operand.<no memory space> [shape: f32[1,1], index: 3, kind: input, shape index: {}]   ;;  %s280_s4 = inlined_call_operand.vmem [shape: f32[5,1], index: 4, kind: input, shape index: {}]   ;;  %s281_s5 = inlined_call_operand.hbm [shape: f32[1,1], index: 5, kind: output, shape index: {}]  }
   0x1   :  { %v88_v0 = vld [vmem:[%s280_s4] sm:$0x1f]  ;;  %182 = vset.pattern.permute.xlu0 %v205_v1 }
   0x2   :  { %91 = vperm.xlu0 %182, %v88_v0  }
   0x3   :  { %11 = vsyncpa [#allocation5], 0  ;;  %v28_v2 = vld [vmem:[%s276_s0] sm:$0x1f]  ;;  %vm48_vm0 = vcmask 1044480   ;;  %v30_v11 = vlaneseq  ;;  %v206_v16 = vmov 0.0   ;;  %v112_v49 = vstv %s279_s3 }
   0x4   :  { %v49_v3 = vsel %vm48_vm0, %v28_v2, -inf  ;;  %v173_v14 = vld [vmem:[%s277_s1] ss:$0 sm:$0xff]  ;;  %s114_s24 = ssub.f32 1.0, %s279_s3  ;;  %vm139_vm4 = vcmask 1040384   ;;  %s193_s30 = scalar_lea.hbm %s281_s5, 16 }
   0x5   :  { %v50_v4 = vrot.slane %v49_v3, 4  ;;  %v31_v13 = vshrl.u32 %v30_v11, 7  ;;  %v175_v15 = vld [vmem:[%s278_s2] ss:$0 sm:$0xff]  ;;  %p194_p0 = scmp.ne.s32.totalorder %s281_s5, %s193_s30  ;;  %p197_p1 = scmp.lt.u32.totalorder %s193_s30, %s281_s5 }
   0x6   :  { %v117_v50 = vstv %s114_s24 }
   0x7   :  { %v51_v5 = vmax.f32 %v49_v3, %v50_v4  ;;  %vm37_vm1 = vcmp.eq.s32.totalorder %v31_v13, %v173_v14  ;;  %vm45_vm2 = vcmp.eq.s32.totalorder %v31_v13, %v175_v15  ;;  %p199_p2 = pnand %p197_p1, %p194_p0 }
   0x8   :  { %v174_v17 = vsel %vm37_vm1, 1.0, %v206_v16  ;;  %v176_v18 = vsel %vm45_vm2, 1.0, %v206_v16 }
   0x9   :  { %v52_v6 = vrot.slane %v51_v5, 2 }
   0xb   :  { %v53_v7 = vmax.f32 %v51_v5, %v52_v6 }
   0xd   :  { %v54_v8 = vrot.slane %v53_v7, 1 }
   0xf   :  { %v55_v9 = vmax.f32 %v53_v7, %v54_v8 }
  0x11   :  { %v56_v10 = vsub.f32 %v28_v2, %v55_v9 }
  0x13   :  { %v57_v12 = vmul.f32 1.442695, %v56_v10  ;;  %v72_v19 = vmul.f32 %v174_v17, %v56_v10  ;;  %v80_v20 = vmul.f32 %v176_v18, %v56_v10 }
  0x15   :  { %183 = vpow2.f32 %v57_v12  ;;  %v73_v22 = vsel %vm48_vm0, %v72_v19, 0.0  ;;  %v81_v23 = vsel %vm48_vm0, %v80_v20, 0.0 }
  0x16   :  { %v74_v25 = vrot.slane %v73_v22, 4  ;;  %v82_v26 = vrot.slane %v81_v23, 4 }
  0x18   :  { %v75_v28 = vadd.f32 %v74_v25, %v73_v22  ;;  %v83_v29 = vadd.f32 %v82_v26, %v81_v23 }
  0x1a   :  { %v76_v31 = vrot.slane %v75_v28, 2  ;;  %v84_v32 = vrot.slane %v83_v29, 2 }
  0x1c   :  { %v77_v34 = vadd.f32 %v76_v31, %v75_v28  ;;  %v85_v35 = vadd.f32 %v84_v32, %v83_v29 }
  0x1e   :  { %v78_v37 = vrot.slane %v77_v34, 1  ;;  %v86_v38 = vrot.slane %v85_v35, 1 }
  0x1f   :  { %v184_v21 = vpop.eup %183 }
  0x20   :  { %v59_v24 = vsel %vm48_vm0, %v184_v21, 0.0  ;;  %v79_v40 = vadd.f32 %v78_v37, %v77_v34  ;;  %v87_v41 = vadd.f32 %v86_v38, %v85_v35 }
  0x21   :  { %v60_v27 = vrot.slane %v59_v24, 4 }
  0x22   :  { %v110_v43 = vmul.f32 1.442695, %v79_v40  ;;  %v115_v44 = vmul.f32 1.442695, %v87_v41 }
  0x23   :  { %v61_v30 = vadd.f32 %v60_v27, %v59_v24 }
  0x25   :  { %v62_v33 = vrot.slane %v61_v30, 2 }
  0x27   :  { %v63_v36 = vadd.f32 %v62_v33, %v61_v30 }
  0x29   :  { %v64_v39 = vrot.slane %v63_v36, 1 }
  0x2b   :  { %v65_v42 = vadd.f32 %v64_v39, %v63_v36 }
  0x2d   :  { %185 = vrcp.f32 %v65_v42 }
  0x2e   :  { %187 = vpow2.f32 %v110_v43 }
  0x2f   :  { %189 = vpow2.f32 %v115_v44 }
  0x30   :  { %191 = vlog2.f32 %v65_v42 }
  0x37   :  { %v186_v45 = vpop.eup %185 }
  0x38   :  { %v188_v46 = vpop.eup %187  ;;  %v67_v47 = vmul.f32 %v186_v45, %v65_v42 }
  0x39   :  { %v190_v48 = vpop.eup %189  ;;  %v113_v55 = vmul.f32 %v188_v46, %v112_v49 }
  0x3a   :  { %v68_v54 = vsub.f32 2.0, %v67_v47  ;;  %v118_v56 = vmul.f32 %v190_v48, %v117_v50  ;;  %v192_v61 = vpop.eup %191 }
  0x3b   :  { %v71_v4 = vmul.f32 0.6931472, %v192_v61 }
  0x3c   :  { %v69_v0 = vmul.f32 %v186_v45, %v68_v54  ;;  %v119_v1 = vadd.f32 %v118_v56, %v113_v55 }
  0x3d   :  { %v124_v10 = vsub.f32 %v71_v4, %v79_v40  ;;  %v127_v15 = vsub.f32 %v71_v4, %v87_v41 }
  0x3e   :  { %v120_v7 = vmul.f32 %v119_v1, %v69_v0 }
  0x40   :  { %v121_v14 = vsub.f32 1.0, %v120_v7 }
  0x42   :  { %v122_v19 = vmul.f32 %v121_v14, %v121_v14 }
  0x81   :  { %v92_v51 = vpop.permute.xlu0 %91 }
  0x82   :  { %v94_v52 = vmul.f32 %v174_v17, %v92_v51  ;;  %v102_v53 = vmul.f32 %v176_v18, %v92_v51  ;;  %v132_v18 = vand.u32 127, %v30_v11 }
  0x84   :  { %v95_v57 = vsel %vm48_vm0, %v94_v52, 0.0  ;;  %v103_v58 = vsel %vm48_vm0, %v102_v53, 0.0  ;;  %vm136_vm3 = vcmp.lt.s32.totalorder %v132_v18, 8 }
  0x85   :  { %v96_v59 = vrot.slane %v95_v57, 4  ;;  %v104_v60 = vrot.slane %v103_v58, 4 }
  0x87   :  { %v97_v62 = vadd.f32 %v96_v59, %v95_v57  ;;  %v105_v63 = vadd.f32 %v104_v60, %v103_v58 }
  0x89   :  { %v98_v2 = vrot.slane %v97_v62, 2  ;;  %v106_v3 = vrot.slane %v105_v63, 2 }
  0x8b   :  { %v99_v5 = vadd.f32 %v98_v2, %v97_v62  ;;  %v107_v6 = vadd.f32 %v106_v3, %v105_v63 }
  0x8d   :  { %v100_v8 = vrot.slane %v99_v5, 1  ;;  %v108_v9 = vrot.slane %v107_v6, 1 }
  0x8f   :  { %v101_v12 = vadd.f32 %v100_v8, %v99_v5  ;;  %v109_v13 = vadd.f32 %v108_v9, %v107_v6 }
  0x91   :  { %v123_v16 = vmul.f32 %v112_v49, %v101_v12  ;;  %v126_v17 = vmul.f32 %v117_v50, %v109_v13 }
  0x93   :  { %v125_v20 = vmul.f32 %v124_v10, %v123_v16  ;;  %v128_v21 = vmul.f32 %v127_v15, %v126_v17 }
  0x95   :  { %v129_v22 = vadd.f32 %v128_v21, %v125_v20 }
  0x97   :  { %v130_v23 = vmul.f32 %v129_v22, %v122_v19 }
  0x99   :  { %v137_v24 = vsel %vm136_vm3, %v130_v23, 0.0 }
  0x9a   :  { %v140_v25 = vsel %vm139_vm4, %v137_v24, 0.0 }
  0x9b   :  { %141 = vadd.xlane.f32.xlu0 %v140_v25 }
 0x128   :  { %v142_v26 = vpop.xlane.xlu0 %141 }
 0x129   :  { %v143_v27 = vrot.slane %v142_v26, 4 }
 0x12b   :  { %v144_v28 = vadd.f32 %v143_v27, %v142_v26 }
 0x12d   :  { %v145_v29 = vrot.slane %v144_v28, 2 }
 0x12f   :  { %v146_v30 = vadd.f32 %v145_v29, %v144_v28 }
 0x131   :  { %v147_v31 = vrot.slane %v146_v30, 1 }
 0x133   :  { %v148_v32 = vadd.f32 %v147_v31, %v146_v30 }
 0x135   :  { %177 = vpush %v148_v32 }
 0x166   :  { %s178_s3 = spop %177 }
 0x167   :  { %s157_s27 = smul.f32 0.125, %s178_s3 }
 0x169   :  { %159 = sst [smem:[#allocation4]] %s157_s27 }
 0x16a   :  { %202 = shalt.err (!%p199_p2)
}
 0x16b   :  { %s207_s10 = smov [#allocation4]  }
 0x16c   :  { %167 = dma.smem_to_hbm %s207_s10, 16, %s281_s5, [#allocation5]  }
 0x16d   :  { %203 = dma.done.wait [#allocation5], 16  }
 0x16e   :  { %204 = vsyncadd [#allocation5], 4294967280 }
 0x16f   :  { %171 = sfence }
 0x170   :  { %172 = vsyncpa [#allocation5], 1 }

</bundles_post_ra>
